<compile_context>
chip_gen: v7x
topology: tpu7x:2x2x1
jax: 0.10.0
libtpu: 0.0.40
codegen_flags: <defaults>
</compile_context>

<pallas_src>
import functools
import math

import jax
import jax.numpy as jnp
import numpy as np
from jax.experimental import pallas as pl
from jax.experimental.pallas import tpu as pltpu


def _round_up(x, m):
    return ((x + m - 1) // m) * m


def _vmem_capacity_bytes():
    """Physical VMEM per core (128 MiB on v5e/v6e, 64 MiB on v7x)."""
    try:
        info = pltpu.get_tpu_info()
        cap = int(getattr(info, "vmem_capacity_bytes", 0) or 0)
        if cap > 0:
            return cap
    except Exception:
        pass
    return 64 * 1024 * 1024  # conservative default: assume the smallest (v7x)


# ---------------------------------------------------------------------------
# norm == 2 : MXU decomposition
#   ||(h - t) + r||^2 = ||h - t||^2 + ||r||^2 + (2*(h - t)) @ r^T
# row_sq / rel_sq are precomputed once in the wrapper; the 2x is folded into
# the small (Bt, D) GEMM operand instead of the (Bt, Rt) result.
# ---------------------------------------------------------------------------
def _l2_kernel(ht_ref, rowsq_ref, rT_ref, relsq_ref, o_ref, *, mxu_dtype):
    # ht_ref    : (Bt, D)   precomputed head - tail embeddings (f32)
    # rowsq_ref : (Bt, 1)   precomputed ||h - t||^2
    # rT_ref    : (D, Rt)   relation table, transposed (relations on lanes)
    # relsq_ref : (1, Rt)   precomputed ||r||^2
    # o_ref     : (Bt, Rt)  logits tile
    ht2 = (ht_ref[...].astype(jnp.float32) * 2.0).astype(mxu_dtype)   # (Bt, D)
    rT = rT_ref[...].astype(mxu_dtype)                                # (D, Rt)
    cross2 = jnp.dot(ht2, rT, preferred_element_type=jnp.float32)     # MXU, (Bt, Rt)
    sq = (rowsq_ref[...].astype(jnp.float32)
          + relsq_ref[...].astype(jnp.float32) + cross2)
    sq = jnp.maximum(sq, 0.0)            # cancellation clamp: no NaN from sqrt
    o_ref[...] = (-jnp.sqrt(sq)).astype(o_ref.dtype)


# ---------------------------------------------------------------------------
# norm == 1 : lane-dense VPU accumulate
#   acc(Bt, Rt) += |ht[:, d] + rT[d, :]|   over the current depth chunk.
# The reduction over depth chunks is a grid axis ("arbitrary") with a VMEM
# accumulator, so the in-kernel unroll is bounded by d_tile for any D.
# ---------------------------------------------------------------------------
def _l1_kernel(ht_ref, rT_ref, o_ref, acc_ref, *, d_tile):
    # ht_ref  : (Bt, d_tile)  depth chunk of (head - tail), streamed per step
    # rT_ref  : (Dp, Rt)      full-depth relation tile (VMEM-resident over i, k)
    # o_ref   : (Bt, Rt)
    # acc_ref : (Bt, Rt) f32  accumulator over the depth grid axis
    k = pl.program_id(2)

    @pl.when(k == 0)
    def _():
        acc_ref[...] = jnp.zeros_like(acc_ref)

    ht_blk = ht_ref[...].astype(jnp.float32)                      # (Bt, d_tile)
    base = pl.multiple_of(k * d_tile, d_tile)
    r_blk = rT_ref[pl.ds(base, d_tile), :].astype(jnp.float32)    # (d_tile, Rt)

    partial = jnp.abs(ht_blk[:, 0:1] + r_blk[0:1, :])
    for d in range(1, d_tile):            # static unroll, bounded by d_tile
        partial = partial + jnp.abs(ht_blk[:, d:d + 1] + r_blk[d:d + 1, :])
    acc_ref[...] += partial

    @pl.when(k == pl.num_programs(2) - 1)
    def _():
        o_ref[...] = (-acc_ref[...]).astype(o_ref.dtype)


def relation_predictor_forward(entity_emb, relation_emb, heads, tails, *,
                               norm=1, batch_tile=None, relation_tile=None,
                               d_tile=None, mxu_bf16=None, out_dtype=jnp.float32):
    """TransE logits: -|| E[heads] + R - E[tails] ||_norm  ->  (B, num_relations)."""
    if norm not in (1, 2):
        # TODO(synk): general p-norm (p not in {1, 2}) not implemented in-kernel.
        raise NotImplementedError(f"norm={norm} not supported (only 1 or 2)")

    B = int(heads.shape[0])
    R, D = int(relation_emb.shape[0]), int(relation_emb.shape[1])
    out_isize = np.dtype(out_dtype).itemsize

    # ---- glue: gather + tile-invariant precomputes (done ONCE, not per tile)
    # TODO(synk): fuse this gather via scalar prefetch + per-row DMA (v5e win).
    h = jnp.take(entity_emb, heads, axis=0).astype(jnp.float32)
    t = jnp.take(entity_emb, tails, axis=0).astype(jnp.float32)
    ht = h - t                                            # (B, D)
    rel_f32 = relation_emb.astype(jnp.float32)
    rel_T = rel_f32.T                                     # (D, R): relations on lanes

    if mxu_bf16 is None:   # auto: full-rate bf16 MXU only when inputs already bf16
        mxu_bf16 = (entity_emb.dtype == jnp.bfloat16
                    and relation_emb.dtype == jnp.bfloat16)
    mxu_dtype = jnp.bfloat16 if mxu_bf16 else jnp.float32

    # ---- generation-aware VMEM budget (v7x: 64 MiB VMEM, v5e/v6e: 128 MiB) --
    vmem_cap = _vmem_capacity_bytes()
    vmem_limit = (64 if vmem_cap >= 128 * 1024 * 1024 else 32) * 1024 * 1024
    budget = (vmem_limit * 3) // 4

    if batch_tile is None:
        batch_tile = min(256, _round_up(B, 8))
    batch_tile = _round_up(batch_tile, 8)

    Rp128 = _round_up(R, 128)

    # ======================================================================
    # norm == 2 : one GEMM per tile on the MXU
    # ======================================================================
    if norm == 2:
        row_sq = jnp.sum(ht * ht, axis=1, keepdims=True)          # (B, 1)
        rel_sq = jnp.sum(rel_f32 * rel_f32, axis=1)[None, :]      # (1, R)

        def vmem_est(bt, rt):
            # double-buffered pipeline copies; skinny vectors (sub)lane-padded
            return 2 * (bt * D * 4 + bt * 128 * 4
                        + D * rt * 4 + 8 * rt * 4 + bt * rt * out_isize)

        if relation_tile is None:
            relation_tile = (Rp128 if vmem_est(batch_tile, Rp128) <= budget
                             else min(512, Rp128))
        relation_tile = _round_up(relation_tile, 128)
        while vmem_est(batch_tile, relation_tile) > budget and relation_tile > 128:
            relation_tile = _round_up(relation_tile // 2, 128)
        while vmem_est(batch_tile, relation_tile) > budget and batch_tile > 8:
            batch_tile = max(8, _round_up(batch_tile // 2, 8))

        Bp = _round_up(B, batch_tile)
        Rp = _round_up(R, relation_tile)
        if Bp != B:
            ht = jnp.pad(ht, ((0, Bp - B), (0, 0)))
            row_sq = jnp.pad(row_sq, ((0, Bp - B), (0, 0)))
        if Rp != R:
            rel_T = jnp.pad(rel_T, ((0, 0), (0, Rp - R)))
            rel_sq = jnp.pad(rel_sq, ((0, 0), (0, Rp - R)))

        nb, nr = Bp // batch_tile, Rp // relation_tile
        kern = functools.partial(_l2_kernel, mxu_dtype=mxu_dtype)

        if nr == 1:
            # Relation table resident in VMEM: constant block index => the
            # (D, Rp) tile is DMA'd from HBM once, not once per batch tile.
            grid = (nb,)
            in_specs = [
                pl.BlockSpec((batch_tile, D), lambda i: (i, 0)),
                pl.BlockSpec((batch_tile, 1), lambda i: (i, 0)),
                pl.BlockSpec((D, Rp), lambda i: (0, 0)),
                pl.BlockSpec((1, Rp), lambda i: (0, 0)),
            ]
            out_specs = pl.BlockSpec((batch_tile, Rp), lambda i: (i, 0))
            dim_sem = ("parallel",)
        else:
            # Too big to keep resident: relation-outer / batch-inner so each
            # relation tile is streamed from HBM exactly once; only the small
            # (Bt, D) / (Bt, 1) inputs are re-fetched.
            grid = (nr, nb)
            in_specs = [
                pl.BlockSpec((batch_tile, D), lambda j, i: (i, 0)),
                pl.BlockSpec((batch_tile, 1), lambda j, i: (i, 0)),
                pl.BlockSpec((D, relation_tile), lambda j, i: (0, j)),
                pl.BlockSpec((1, relation_tile), lambda j, i: (0, j)),
            ]
            out_specs = pl.BlockSpec((batch_tile, relation_tile),
                                     lambda j, i: (i, j))
            dim_sem = ("parallel", "parallel")

        out = pl.pallas_call(
            kern,
            out_shape=jax.ShapeDtypeStruct((Bp, Rp), out_dtype),
            grid_spec=pltpu.PrefetchScalarGridSpec(
                num_scalar_prefetch=0, grid=grid,
                in_specs=in_specs, out_specs=out_specs),
            compiler_params=pltpu.CompilerParams(
                dimension_semantics=dim_sem, vmem_limit_bytes=vmem_limit),
        )(ht, row_sq, rel_T, rel_sq)
        return out[:B, :R]

    # ======================================================================
    # norm == 1 : lane-dense VPU accumulate with a depth-reduction grid axis
    # ======================================================================
    if d_tile is None:
        d_tile = min(128, _round_up(D, 8))
    d_tile = _round_up(d_tile, 8)
    Dp = _round_up(D, d_tile)

    def vmem_est1(bt, rt):
        return (2 * (bt * d_tile * 4 + Dp * rt * 4 + bt * rt * out_isize)
                + bt * rt * 4)                               # + f32 accumulator

    if relation_tile is None:
        relation_tile = (Rp128 if vmem_est1(batch_tile, Rp128) <= budget
                         else min(512, Rp128))
    relation_tile = _round_up(relation_tile, 128)
    while vmem_est1(batch_tile, relation_tile) > budget and relation_tile > 128:
        relation_tile = _round_up(relation_tile // 2, 128)
    while vmem_est1(batch_tile, relation_tile) > budget and batch_tile > 8:
        batch_tile = max(8, _round_up(batch_tile // 2, 8))

    Bp = _round_up(B, batch_tile)
    Rp = _round_up(R, relation_tile)
    if Bp != B or Dp != D:
        ht = jnp.pad(ht, ((0, Bp - B), (0, Dp - D)))        # zero pad => |0+0| adds 0
    if Dp != D or Rp != R:
        rel_T = jnp.pad(rel_T, ((0, Dp - D), (0, Rp - R)))

    nb, nr, nk = Bp // batch_tile, Rp // relation_tile, Dp // d_tile
    kern = functools.partial(_l1_kernel, d_tile=d_tile)

    out = pl.pallas_call(
        kern,
        out_shape=jax.ShapeDtypeStruct((Bp, Rp), out_dtype),
        grid_spec=pltpu.PrefetchScalarGridSpec(
            num_scalar_prefetch=0,
            grid=(nr, nb, nk),   # relation-outer, batch, depth (reduction) inner
            in_specs=[
                # (Bt, d_tile) depth chunk of ht, streamed along the k axis.
                pl.BlockSpec((batch_tile, d_tile), lambda j, i, k: (i, k)),
                # Full-depth relation tile: block index depends only on j, so
                # it stays resident in VMEM across the whole (i, k) sweep.
                pl.BlockSpec((Dp, relation_tile), lambda j, i, k: (0, j)),
            ],
            out_specs=pl.BlockSpec((batch_tile, relation_tile),
                                   lambda j, i, k: (i, j)),
            scratch_shapes=[pltpu.VMEM((batch_tile, relation_tile), jnp.float32)],
        ),
        compiler_params=pltpu.CompilerParams(
            dimension_semantics=("parallel", "parallel", "arbitrary"),
            vmem_limit_bytes=vmem_limit),
    )(ht, rel_T)
    return out[:B, :R]


def xavier_uniform(key, shape, dtype=jnp.float32):
    fan_out, fan_in = shape  # nn.Embedding weight: (num_embeddings, embedding_dim)
    bound = math.sqrt(6.0 / (fan_in + fan_out))
    return jax.random.uniform(key, shape, dtype=dtype, minval=-bound, maxval=bound)


def reference_forward(entity_emb, relation_emb, heads, tails, norm=1):
    h = jnp.take(entity_emb, heads, axis=0)
    t = jnp.take(entity_emb, tails, axis=0)
    diff = h[:, None, :] + relation_emb[None, :, :] - t[:, None, :]
    if norm == 1:
        dist = jnp.sum(jnp.abs(diff), axis=2)
    else:
        dist = jnp.sqrt(jnp.sum(diff * diff, axis=2))
    return -dist


if __name__ == "__main__":
    num_entities, num_relations, embedding_dim, batch = 64, 16, 32, 8

    key = jax.random.PRNGKey(0)
    k_ent, k_rel, k_h, k_t = jax.random.split(key, 4)
    entity_emb = xavier_uniform(k_ent, (num_entities, embedding_dim))
    relation_emb = xavier_uniform(k_rel, (num_relations, embedding_dim))
    heads = jax.random.randint(k_h, (batch,), 0, num_entities, dtype=jnp.int32)
    tails = jax.random.randint(k_t, (batch,), 0, num_entities, dtype=jnp.int32)

    # L1 path (VPU accumulate, f32): exact to f32 precision.
    out1 = jax.block_until_ready(
        relation_predictor_forward(entity_emb, relation_emb, heads, tails, norm=1))
    ref1 = reference_forward(entity_emb, relation_emb, heads, tails, norm=1)
    assert out1.shape == (batch, num_relations)
    assert jnp.allclose(out1, ref1, atol=1e-4, rtol=1e-4), "norm=1 mismatch"

    # L2 path with f32 MXU operands (default for f32 embeddings).
    out2 = jax.block_until_ready(
        relation_predictor_forward(entity_emb, relation_emb, heads, tails, norm=2))
    ref2 = reference_forward(entity_emb, relation_emb, heads, tails, norm=2)
    assert out2.shape == (batch, num_relations)
    assert jnp.allclose(out2, ref2, atol=5e-3, rtol=5e-3), "norm=2 mismatch"

    # L2 path with bf16 MXU operands (full MXU rate on all generations);
    # looser tolerance by design -- see cancellation caveat in the header.
    out2b = jax.block_until_ready(
        relation_predictor_forward(entity_emb, relation_emb, heads, tails,
                                   norm=2, mxu_bf16=True))
    assert jnp.allclose(out2b, ref2, atol=3e-2, rtol=3e-2), "norm=2 bf16 mismatch"

    print("KERNEL_OK")
</pallas_src>

<mosaic_0001>
module attributes {stable_mosaic.version = 11 : i64} {
  func.func @_l1_kernel(%arg0: i32, %arg1: i32, %arg2: i32, %arg3: memref<8x32xf32, #tpu.memory_space<vmem>>, %arg4: memref<32x128xf32, #tpu.memory_space<vmem>>, %arg5: memref<8x128xf32, #tpu.memory_space<vmem>>, %arg6: memref<8x128xf32, #tpu.memory_space<vmem>>) attributes {dimension_semantics = [#tpu.dimension_semantics<parallel>, #tpu.dimension_semantics<parallel>, #tpu.dimension_semantics<arbitrary>], iteration_bounds = array<i64: 1, 1, 1>, scalar_prefetch = 0 : i64, scratch_operands = 1 : i64, tpu.core_type = #tpu.core_type<tc>, window_params = [{transform_indices = @transform_0, window_bounds = array<i64: 8, 32>}, {transform_indices = @transform_1, window_bounds = array<i64: 32, 128>}, {transform_indices = @transform_2, window_bounds = array<i64: 8, 128>}]} {
    %c0_i32 = arith.constant 0 : i32
    %0 = arith.cmpi eq, %arg2, %c0_i32 : i32
    %1 = arith.extui %0 : i1 to i32
    %c0_i32_0 = arith.constant 0 : i32
    %2 = arith.cmpi ne, %1, %c0_i32_0 : i32
    scf.if %2 {
      %cst = arith.constant 0.000000e+00 : f32
      %237 = vector.broadcast %cst : f32 to vector<8x128xf32>
      %c0_9 = arith.constant 0 : index
      %c0_10 = arith.constant 0 : index
      %238 = vector.load %arg6[%c0_9, %c0_10] : memref<8x128xf32, #tpu.memory_space<vmem>>, vector<8x128xf32>
      tpu.vector_store %arg6[%c0_9, %c0_10], %237 {strides = array<i32>} : memref<8x128xf32, #tpu.memory_space<vmem>>, vector<8x128xf32>,
    } else {
    }
    %c0 = arith.constant 0 : index
    %c0_1 = arith.constant 0 : index
    %3 = vector.load %arg3[%c0, %c0_1] : memref<8x32xf32, #tpu.memory_space<vmem>>, vector<8x32xf32>
    %c32_i32 = arith.constant 32 : i32
    %4 = arith.muli %arg2, %c32_i32 : i32
    %5 = tpu.assume_multiple %4, 32 : i32
    %6 = arith.index_cast %5 : i32 to index
    %c0_2 = arith.constant 0 : index
    %7 = vector.load %arg4[%6, %c0_2] : memref<32x128xf32, #tpu.memory_space<vmem>>, vector<32x128xf32>
    %8 = vector.extract_strided_slice %3 {offsets = [0, 0], sizes = [8, 1], strides = [1, 1]} : vector<8x32xf32> to vector<8x1xf32>
    %9 = vector.extract_strided_slice %7 {offsets = [0, 0], sizes = [1, 128], strides = [1, 1]} : vector<32x128xf32> to vector<1x128xf32>
    %10 = vector.broadcast %8 : vector<8x1xf32> to vector<8x128xf32>
    %11 = vector.broadcast %9 : vector<1x128xf32> to vector<8x128xf32>
    %12 = arith.addf %10, %11 : vector<8x128xf32>
    %13 = math.absf %12 : vector<8x128xf32>
    %14 = vector.extract_strided_slice %3 {offsets = [0, 1], sizes = [8, 1], strides = [1, 1]} : vector<8x32xf32> to vector<8x1xf32>
    %15 = vector.extract_strided_slice %7 {offsets = [1, 0], sizes = [1, 128], strides = [1, 1]} : vector<32x128xf32> to vector<1x128xf32>
    %16 = vector.broadcast %14 : vector<8x1xf32> to vector<8x128xf32>
    %17 = vector.broadcast %15 : vector<1x128xf32> to vector<8x128xf32>
    %18 = arith.addf %16, %17 : vector<8x128xf32>
    %19 = math.absf %18 : vector<8x128xf32>
    %20 = arith.addf %13, %19 : vector<8x128xf32>
    %21 = vector.extract_strided_slice %3 {offsets = [0, 2], sizes = [8, 1], strides = [1, 1]} : vector<8x32xf32> to vector<8x1xf32>
    %22 = vector.extract_strided_slice %7 {offsets = [2, 0], sizes = [1, 128], strides = [1, 1]} : vector<32x128xf32> to vector<1x128xf32>
    %23 = vector.broadcast %21 : vector<8x1xf32> to vector<8x128xf32>
    %24 = vector.broadcast %22 : vector<1x128xf32> to vector<8x128xf32>
    %25 = arith.addf %23, %24 : vector<8x128xf32>
    %26 = math.absf %25 : vector<8x128xf32>
    %27 = arith.addf %20, %26 : vector<8x128xf32>
    %28 = vector.extract_strided_slice %3 {offsets = [0, 3], sizes = [8, 1], strides = [1, 1]} : vector<8x32xf32> to vector<8x1xf32>
    %29 = vector.extract_strided_slice %7 {offsets = [3, 0], sizes = [1, 128], strides = [1, 1]} : vector<32x128xf32> to vector<1x128xf32>
    %30 = vector.broadcast %28 : vector<8x1xf32> to vector<8x128xf32>
    %31 = vector.broadcast %29 : vector<1x128xf32> to vector<8x128xf32>
    %32 = arith.addf %30, %31 : vector<8x128xf32>
    %33 = math.absf %32 : vector<8x128xf32>
    %34 = arith.addf %27, %33 : vector<8x128xf32>
    %35 = vector.extract_strided_slice %3 {offsets = [0, 4], sizes = [8, 1], strides = [1, 1]} : vector<8x32xf32> to vector<8x1xf32>
    %36 = vector.extract_strided_slice %7 {offsets = [4, 0], sizes = [1, 128], strides = [1, 1]} : vector<32x128xf32> to vector<1x128xf32>
    %37 = vector.broadcast %35 : vector<8x1xf32> to vector<8x128xf32>
    %38 = vector.broadcast %36 : vector<1x128xf32> to vector<8x128xf32>
    %39 = arith.addf %37, %38 : vector<8x128xf32>
    %40 = math.absf %39 : vector<8x128xf32>
    %41 = arith.addf %34, %40 : vector<8x128xf32>
    %42 = vector.extract_strided_slice %3 {offsets = [0, 5], sizes = [8, 1], strides = [1, 1]} : vector<8x32xf32> to vector<8x1xf32>
    %43 = vector.extract_strided_slice %7 {offsets = [5, 0], sizes = [1, 128], strides = [1, 1]} : vector<32x128xf32> to vector<1x128xf32>
    %44 = vector.broadcast %42 : vector<8x1xf32> to vector<8x128xf32>
    %45 = vector.broadcast %43 : vector<1x128xf32> to vector<8x128xf32>
    %46 = arith.addf %44, %45 : vector<8x128xf32>
    %47 = math.absf %46 : vector<8x128xf32>
    %48 = arith.addf %41, %47 : vector<8x128xf32>
    %49 = vector.extract_strided_slice %3 {offsets = [0, 6], sizes = [8, 1], strides = [1, 1]} : vector<8x32xf32> to vector<8x1xf32>
    %50 = vector.extract_strided_slice %7 {offsets = [6, 0], sizes = [1, 128], strides = [1, 1]} : vector<32x128xf32> to vector<1x128xf32>
    %51 = vector.broadcast %49 : vector<8x1xf32> to vector<8x128xf32>
    %52 = vector.broadcast %50 : vector<1x128xf32> to vector<8x128xf32>
    %53 = arith.addf %51, %52 : vector<8x128xf32>
    %54 = math.absf %53 : vector<8x128xf32>
    %55 = arith.addf %48, %54 : vector<8x128xf32>
    %56 = vector.extract_strided_slice %3 {offsets = [0, 7], sizes = [8, 1], strides = [1, 1]} : vector<8x32xf32> to vector<8x1xf32>
    %57 = vector.extract_strided_slice %7 {offsets = [7, 0], sizes = [1, 128], strides = [1, 1]} : vector<32x128xf32> to vector<1x128xf32>
    %58 = vector.broadcast %56 : vector<8x1xf32> to vector<8x128xf32>
    %59 = vector.broadcast %57 : vector<1x128xf32> to vector<8x128xf32>
    %60 = arith.addf %58, %59 : vector<8x128xf32>
    %61 = math.absf %60 : vector<8x128xf32>
    %62 = arith.addf %55, %61 : vector<8x128xf32>
    %63 = vector.extract_strided_slice %3 {offsets = [0, 8], sizes = [8, 1], strides = [1, 1]} : vector<8x32xf32> to vector<8x1xf32>
    %64 = vector.extract_strided_slice %7 {offsets = [8, 0], sizes = [1, 128], strides = [1, 1]} : vector<32x128xf32> to vector<1x128xf32>
    %65 = vector.broadcast %63 : vector<8x1xf32> to vector<8x128xf32>
    %66 = vector.broadcast %64 : vector<1x128xf32> to vector<8x128xf32>
    %67 = arith.addf %65, %66 : vector<8x128xf32>
    %68 = math.absf %67 : vector<8x128xf32>
    %69 = arith.addf %62, %68 : vector<8x128xf32>
    %70 = vector.extract_strided_slice %3 {offsets = [0, 9], sizes = [8, 1], strides = [1, 1]} : vector<8x32xf32> to vector<8x1xf32>
    %71 = vector.extract_strided_slice %7 {offsets = [9, 0], sizes = [1, 128], strides = [1, 1]} : vector<32x128xf32> to vector<1x128xf32>
    %72 = vector.broadcast %70 : vector<8x1xf32> to vector<8x128xf32>
    %73 = vector.broadcast %71 : vector<1x128xf32> to vector<8x128xf32>
    %74 = arith.addf %72, %73 : vector<8x128xf32>
    %75 = math.absf %74 : vector<8x128xf32>
    %76 = arith.addf %69, %75 : vector<8x128xf32>
    %77 = vector.extract_strided_slice %3 {offsets = [0, 10], sizes = [8, 1], strides = [1, 1]} : vector<8x32xf32> to vector<8x1xf32>
    %78 = vector.extract_strided_slice %7 {offsets = [10, 0], sizes = [1, 128], strides = [1, 1]} : vector<32x128xf32> to vector<1x128xf32>
    %79 = vector.broadcast %77 : vector<8x1xf32> to vector<8x128xf32>
    %80 = vector.broadcast %78 : vector<1x128xf32> to vector<8x128xf32>
    %81 = arith.addf %79, %80 : vector<8x128xf32>
    %82 = math.absf %81 : vector<8x128xf32>
    %83 = arith.addf %76, %82 : vector<8x128xf32>
    %84 = vector.extract_strided_slice %3 {offsets = [0, 11], sizes = [8, 1], strides = [1, 1]} : vector<8x32xf32> to vector<8x1xf32>
    %85 = vector.extract_strided_slice %7 {offsets = [11, 0], sizes = [1, 128], strides = [1, 1]} : vector<32x128xf32> to vector<1x128xf32>
    %86 = vector.broadcast %84 : vector<8x1xf32> to vector<8x128xf32>
    %87 = vector.broadcast %85 : vector<1x128xf32> to vector<8x128xf32>
    %88 = arith.addf %86, %87 : vector<8x128xf32>
    %89 = math.absf %88 : vector<8x128xf32>
    %90 = arith.addf %83, %89 : vector<8x128xf32>
    %91 = vector.extract_strided_slice %3 {offsets = [0, 12], sizes = [8, 1], strides = [1, 1]} : vector<8x32xf32> to vector<8x1xf32>
    %92 = vector.extract_strided_slice %7 {offsets = [12, 0], sizes = [1, 128], strides = [1, 1]} : vector<32x128xf32> to vector<1x128xf32>
    %93 = vector.broadcast %91 : vector<8x1xf32> to vector<8x128xf32>
    %94 = vector.broadcast %92 : vector<1x128xf32> to vector<8x128xf32>
    %95 = arith.addf %93, %94 : vector<8x128xf32>
    %96 = math.absf %95 : vector<8x128xf32>
    %97 = arith.addf %90, %96 : vector<8x128xf32>
    %98 = vector.extract_strided_slice %3 {offsets = [0, 13], sizes = [8, 1], strides = [1, 1]} : vector<8x32xf32> to vector<8x1xf32>
    %99 = vector.extract_strided_slice %7 {offsets = [13, 0], sizes = [1, 128], strides = [1, 1]} : vector<32x128xf32> to vector<1x128xf32>
    %100 = vector.broadcast %98 : vector<8x1xf32> to vector<8x128xf32>
    %101 = vector.broadcast %99 : vector<1x128xf32> to vector<8x128xf32>
    %102 = arith.addf %100, %101 : vector<8x128xf32>
    %103 = math.absf %102 : vector<8x128xf32>
    %104 = arith.addf %97, %103 : vector<8x128xf32>
    %105 = vector.extract_strided_slice %3 {offsets = [0, 14], sizes = [8, 1], strides = [1, 1]} : vector<8x32xf32> to vector<8x1xf32>
    %106 = vector.extract_strided_slice %7 {offsets = [14, 0], sizes = [1, 128], strides = [1, 1]} : vector<32x128xf32> to vector<1x128xf32>
    %107 = vector.broadcast %105 : vector<8x1xf32> to vector<8x128xf32>
    %108 = vector.broadcast %106 : vector<1x128xf32> to vector<8x128xf32>
    %109 = arith.addf %107, %108 : vector<8x128xf32>
    %110 = math.absf %109 : vector<8x128xf32>
    %111 = arith.addf %104, %110 : vector<8x128xf32>
    %112 = vector.extract_strided_slice %3 {offsets = [0, 15], sizes = [8, 1], strides = [1, 1]} : vector<8x32xf32> to vector<8x1xf32>
    %113 = vector.extract_strided_slice %7 {offsets = [15, 0], sizes = [1, 128], strides = [1, 1]} : vector<32x128xf32> to vector<1x128xf32>
    %114 = vector.broadcast %112 : vector<8x1xf32> to vector<8x128xf32>
    %115 = vector.broadcast %113 : vector<1x128xf32> to vector<8x128xf32>
    %116 = arith.addf %114, %115 : vector<8x128xf32>
    %117 = math.absf %116 : vector<8x128xf32>
    %118 = arith.addf %111, %117 : vector<8x128xf32>
    %119 = vector.extract_strided_slice %3 {offsets = [0, 16], sizes = [8, 1], strides = [1, 1]} : vector<8x32xf32> to vector<8x1xf32>
    %120 = vector.extract_strided_slice %7 {offsets = [16, 0], sizes = [1, 128], strides = [1, 1]} : vector<32x128xf32> to vector<1x128xf32>
    %121 = vector.broadcast %119 : vector<8x1xf32> to vector<8x128xf32>
    %122 = vector.broadcast %120 : vector<1x128xf32> to vector<8x128xf32>
    %123 = arith.addf %121, %122 : vector<8x128xf32>
    %124 = math.absf %123 : vector<8x128xf32>
    %125 = arith.addf %118, %124 : vector<8x128xf32>
    %126 = vector.extract_strided_slice %3 {offsets = [0, 17], sizes = [8, 1], strides = [1, 1]} : vector<8x32xf32> to vector<8x1xf32>
    %127 = vector.extract_strided_slice %7 {offsets = [17, 0], sizes = [1, 128], strides = [1, 1]} : vector<32x128xf32> to vector<1x128xf32>
    %128 = vector.broadcast %126 : vector<8x1xf32> to vector<8x128xf32>
    %129 = vector.broadcast %127 : vector<1x128xf32> to vector<8x128xf32>
    %130 = arith.addf %128, %129 : vector<8x128xf32>
    %131 = math.absf %130 : vector<8x128xf32>
    %132 = arith.addf %125, %131 : vector<8x128xf32>
    %133 = vector.extract_strided_slice %3 {offsets = [0, 18], sizes = [8, 1], strides = [1, 1]} : vector<8x32xf32> to vector<8x1xf32>
    %134 = vector.extract_strided_slice %7 {offsets = [18, 0], sizes = [1, 128], strides = [1, 1]} : vector<32x128xf32> to vector<1x128xf32>
    %135 = vector.broadcast %133 : vector<8x1xf32> to vector<8x128xf32>
    %136 = vector.broadcast %134 : vector<1x128xf32> to vector<8x128xf32>
    %137 = arith.addf %135, %136 : vector<8x128xf32>
    %138 = math.absf %137 : vector<8x128xf32>
    %139 = arith.addf %132, %138 : vector<8x128xf32>
    %140 = vector.extract_strided_slice %3 {offsets = [0, 19], sizes = [8, 1], strides = [1, 1]} : vector<8x32xf32> to vector<8x1xf32>
    %141 = vector.extract_strided_slice %7 {offsets = [19, 0], sizes = [1, 128], strides = [1, 1]} : vector<32x128xf32> to vector<1x128xf32>
    %142 = vector.broadcast %140 : vector<8x1xf32> to vector<8x128xf32>
    %143 = vector.broadcast %141 : vector<1x128xf32> to vector<8x128xf32>
    %144 = arith.addf %142, %143 : vector<8x128xf32>
    %145 = math.absf %144 : vector<8x128xf32>
    %146 = arith.addf %139, %145 : vector<8x128xf32>
    %147 = vector.extract_strided_slice %3 {offsets = [0, 20], sizes = [8, 1], strides = [1, 1]} : vector<8x32xf32> to vector<8x1xf32>
    %148 = vector.extract_strided_slice %7 {offsets = [20, 0], sizes = [1, 128], strides = [1, 1]} : vector<32x128xf32> to vector<1x128xf32>
    %149 = vector.broadcast %147 : vector<8x1xf32> to vector<8x128xf32>
    %150 = vector.broadcast %148 : vector<1x128xf32> to vector<8x128xf32>
    %151 = arith.addf %149, %150 : vector<8x128xf32>
    %152 = math.absf %151 : vector<8x128xf32>
    %153 = arith.addf %146, %152 : vector<8x128xf32>
    %154 = vector.extract_strided_slice %3 {offsets = [0, 21], sizes = [8, 1], strides = [1, 1]} : vector<8x32xf32> to vector<8x1xf32>
    %155 = vector.extract_strided_slice %7 {offsets = [21, 0], sizes = [1, 128], strides = [1, 1]} : vector<32x128xf32> to vector<1x128xf32>
    %156 = vector.broadcast %154 : vector<8x1xf32> to vector<8x128xf32>
    %157 = vector.broadcast %155 : vector<1x128xf32> to vector<8x128xf32>
    %158 = arith.addf %156, %157 : vector<8x128xf32>
    %159 = math.absf %158 : vector<8x128xf32>
    %160 = arith.addf %153, %159 : vector<8x128xf32>
    %161 = vector.extract_strided_slice %3 {offsets = [0, 22], sizes = [8, 1], strides = [1, 1]} : vector<8x32xf32> to vector<8x1xf32>
    %162 = vector.extract_strided_slice %7 {offsets = [22, 0], sizes = [1, 128], strides = [1, 1]} : vector<32x128xf32> to vector<1x128xf32>
    %163 = vector.broadcast %161 : vector<8x1xf32> to vector<8x128xf32>
    %164 = vector.broadcast %162 : vector<1x128xf32> to vector<8x128xf32>
    %165 = arith.addf %163, %164 : vector<8x128xf32>
    %166 = math.absf %165 : vector<8x128xf32>
    %167 = arith.addf %160, %166 : vector<8x128xf32>
    %168 = vector.extract_strided_slice %3 {offsets = [0, 23], sizes = [8, 1], strides = [1, 1]} : vector<8x32xf32> to vector<8x1xf32>
    %169 = vector.extract_strided_slice %7 {offsets = [23, 0], sizes = [1, 128], strides = [1, 1]} : vector<32x128xf32> to vector<1x128xf32>
    %170 = vector.broadcast %168 : vector<8x1xf32> to vector<8x128xf32>
    %171 = vector.broadcast %169 : vector<1x128xf32> to vector<8x128xf32>
    %172 = arith.addf %170, %171 : vector<8x128xf32>
    %173 = math.absf %172 : vector<8x128xf32>
    %174 = arith.addf %167, %173 : vector<8x128xf32>
    %175 = vector.extract_strided_slice %3 {offsets = [0, 24], sizes = [8, 1], strides = [1, 1]} : vector<8x32xf32> to vector<8x1xf32>
    %176 = vector.extract_strided_slice %7 {offsets = [24, 0], sizes = [1, 128], strides = [1, 1]} : vector<32x128xf32> to vector<1x128xf32>
    %177 = vector.broadcast %175 : vector<8x1xf32> to vector<8x128xf32>
    %178 = vector.broadcast %176 : vector<1x128xf32> to vector<8x128xf32>
    %179 = arith.addf %177, %178 : vector<8x128xf32>
    %180 = math.absf %179 : vector<8x128xf32>
    %181 = arith.addf %174, %180 : vector<8x128xf32>
    %182 = vector.extract_strided_slice %3 {offsets = [0, 25], sizes = [8, 1], strides = [1, 1]} : vector<8x32xf32> to vector<8x1xf32>
    %183 = vector.extract_strided_slice %7 {offsets = [25, 0], sizes = [1, 128], strides = [1, 1]} : vector<32x128xf32> to vector<1x128xf32>
    %184 = vector.broadcast %182 : vector<8x1xf32> to vector<8x128xf32>
    %185 = vector.broadcast %183 : vector<1x128xf32> to vector<8x128xf32>
    %186 = arith.addf %184, %185 : vector<8x128xf32>
    %187 = math.absf %186 : vector<8x128xf32>
    %188 = arith.addf %181, %187 : vector<8x128xf32>
    %189 = vector.extract_strided_slice %3 {offsets = [0, 26], sizes = [8, 1], strides = [1, 1]} : vector<8x32xf32> to vector<8x1xf32>
    %190 = vector.extract_strided_slice %7 {offsets = [26, 0], sizes = [1, 128], strides = [1, 1]} : vector<32x128xf32> to vector<1x128xf32>
    %191 = vector.broadcast %189 : vector<8x1xf32> to vector<8x128xf32>
    %192 = vector.broadcast %190 : vector<1x128xf32> to vector<8x128xf32>
    %193 = arith.addf %191, %192 : vector<8x128xf32>
    %194 = math.absf %193 : vector<8x128xf32>
    %195 = arith.addf %188, %194 : vector<8x128xf32>
    %196 = vector.extract_strided_slice %3 {offsets = [0, 27], sizes = [8, 1], strides = [1, 1]} : vector<8x32xf32> to vector<8x1xf32>
    %197 = vector.extract_strided_slice %7 {offsets = [27, 0], sizes = [1, 128], strides = [1, 1]} : vector<32x128xf32> to vector<1x128xf32>
    %198 = vector.broadcast %196 : vector<8x1xf32> to vector<8x128xf32>
    %199 = vector.broadcast %197 : vector<1x128xf32> to vector<8x128xf32>
    %200 = arith.addf %198, %199 : vector<8x128xf32>
    %201 = math.absf %200 : vector<8x128xf32>
    %202 = arith.addf %195, %201 : vector<8x128xf32>
    %203 = vector.extract_strided_slice %3 {offsets = [0, 28], sizes = [8, 1], strides = [1, 1]} : vector<8x32xf32> to vector<8x1xf32>
    %204 = vector.extract_strided_slice %7 {offsets = [28, 0], sizes = [1, 128], strides = [1, 1]} : vector<32x128xf32> to vector<1x128xf32>
    %205 = vector.broadcast %203 : vector<8x1xf32> to vector<8x128xf32>
    %206 = vector.broadcast %204 : vector<1x128xf32> to vector<8x128xf32>
    %207 = arith.addf %205, %206 : vector<8x128xf32>
    %208 = math.absf %207 : vector<8x128xf32>
    %209 = arith.addf %202, %208 : vector<8x128xf32>
    %210 = vector.extract_strided_slice %3 {offsets = [0, 29], sizes = [8, 1], strides = [1, 1]} : vector<8x32xf32> to vector<8x1xf32>
    %211 = vector.extract_strided_slice %7 {offsets = [29, 0], sizes = [1, 128], strides = [1, 1]} : vector<32x128xf32> to vector<1x128xf32>
    %212 = vector.broadcast %210 : vector<8x1xf32> to vector<8x128xf32>
    %213 = vector.broadcast %211 : vector<1x128xf32> to vector<8x128xf32>
    %214 = arith.addf %212, %213 : vector<8x128xf32>
    %215 = math.absf %214 : vector<8x128xf32>
    %216 = arith.addf %209, %215 : vector<8x128xf32>
    %217 = vector.extract_strided_slice %3 {offsets = [0, 30], sizes = [8, 1], strides = [1, 1]} : vector<8x32xf32> to vector<8x1xf32>
    %218 = vector.extract_strided_slice %7 {offsets = [30, 0], sizes = [1, 128], strides = [1, 1]} : vector<32x128xf32> to vector<1x128xf32>
    %219 = vector.broadcast %217 : vector<8x1xf32> to vector<8x128xf32>
    %220 = vector.broadcast %218 : vector<1x128xf32> to vector<8x128xf32>
    %221 = arith.addf %219, %220 : vector<8x128xf32>
    %222 = math.absf %221 : vector<8x128xf32>
    %223 = arith.addf %216, %222 : vector<8x128xf32>
    %224 = vector.extract_strided_slice %3 {offsets = [0, 31], sizes = [8, 1], strides = [1, 1]} : vector<8x32xf32> to vector<8x1xf32>
    %225 = vector.extract_strided_slice %7 {offsets = [31, 0], sizes = [1, 128], strides = [1, 1]} : vector<32x128xf32> to vector<1x128xf32>
    %226 = vector.broadcast %224 : vector<8x1xf32> to vector<8x128xf32>
    %227 = vector.broadcast %225 : vector<1x128xf32> to vector<8x128xf32>
    %228 = arith.addf %226, %227 : vector<8x128xf32>
    %229 = math.absf %228 : vector<8x128xf32>
    %230 = arith.addf %223, %229 : vector<8x128xf32>
    %c0_3 = arith.constant 0 : index
    %c0_4 = arith.constant 0 : index
    %231 = vector.load %arg6[%c0_3, %c0_4] : memref<8x128xf32, #tpu.memory_space<vmem>>, vector<8x128xf32>
    %232 = arith.addf %231, %230 : vector<8x128xf32>
    %c0_5 = arith.constant 0 : index
    %c0_6 = arith.constant 0 : index
    %233 = vector.load %arg6[%c0_5, %c0_6] : memref<8x128xf32, #tpu.memory_space<vmem>>, vector<8x128xf32>
    tpu.vector_store %arg6[%c0_5, %c0_6], %232 {strides = array<i32>} : memref<8x128xf32, #tpu.memory_space<vmem>>, vector<8x128xf32>,
    %c0_i32_7 = arith.constant 0 : i32
    %234 = arith.cmpi eq, %arg2, %c0_i32_7 : i32
    %235 = arith.extui %234 : i1 to i32
    %c0_i32_8 = arith.constant 0 : i32
    %236 = arith.cmpi ne, %235, %c0_i32_8 : i32
    scf.if %236 {
      %c0_9 = arith.constant 0 : index
      %c0_10 = arith.constant 0 : index
      %237 = vector.load %arg6[%c0_9, %c0_10] : memref<8x128xf32, #tpu.memory_space<vmem>>, vector<8x128xf32>
      %cst = arith.constant 0.000000e+00 : f32
      %238 = vector.broadcast %cst : f32 to vector<8x128xf32>
      %239 = arith.subf %238, %237 : vector<8x128xf32>
      %c0_11 = arith.constant 0 : index
      %c0_12 = arith.constant 0 : index
      %240 = vector.load %arg5[%c0_11, %c0_12] : memref<8x128xf32, #tpu.memory_space<vmem>>, vector<8x128xf32>
      tpu.vector_store %arg5[%c0_11, %c0_12], %239 {strides = array<i32>} : memref<8x128xf32, #tpu.memory_space<vmem>>, vector<8x128xf32>,
    } else {
    }
    return
  }
  func.func @transform_0(%arg0: i32, %arg1: i32, %arg2: i32) -> (i32, i32) {
    %c0_i32 = arith.constant 0 : i32
    return %arg1, %arg2 : i32, i32
  }
  func.func @transform_1(%arg0: i32, %arg1: i32, %arg2: i32) -> (i32, i32) {
    %c0_i32 = arith.constant 0 : i32
    %c0_i32_0 = arith.constant 0 : i32
    return %c0_i32, %arg0 : i32, i32
  }
  func.func @transform_2(%arg0: i32, %arg1: i32, %arg2: i32) -> (i32, i32) {
    %c0_i32 = arith.constant 0 : i32
    return %arg1, %arg0 : i32, i32
  }
}

</mosaic_0001>

<bundles_post_ra>
// kernel: tpu_custom_call.1
= control target key start
LH: loop header
LB: loop body
LE: loop exit
PB: predicated region body
PF: predicated region fallthrough
CT: control target
= control target key end

     0   :  { %7 = vsyncpa [#allocation4], 0  ;;  %s746_s0 = inlined_call_operand.hbm [shape: f32[8,32], index: 0, kind: input, shape index: {}]   ;;  %s747_s1 = inlined_call_operand.hbm [shape: f32[32,128], index: 1, kind: input, shape index: {}]   ;;  %s748_s2 = inlined_call_operand.hbm [shape: f32[8,128], index: 2, kind: output, shape index: {}]  }
   0x1   :  { %8 = vsyncpa [#allocation7], 0 }
   0x2   :  { %9 = vsyncpa [#allocation5], 0  ;;  %s569_s9 = smov [#allocation3]   ;;  %s570_s11 = smov [#allocation6]  }
   0x3   :  { %s16_s10 = sshll.u32 %s569_s9, 4  ;;  %s25_s12 = sshll.u32 %s570_s11, 4  ;;  %s17_s10 = int_to_ptr.vmem [resolvable:$true] %s16_s10  ;;  %s621_s12 = int_to_ptr.vmem [resolvable:$true] %s25_s12 }
   0x4   :  { %s497_s15 = scalar_lea.hbm %s746_s0, 128 }
   0x5   :  { %p498_p0 = scmp.ne.s32.totalorder %s746_s0, %s497_s15  ;;  %p501_p1 = scmp.lt.u32.totalorder %s497_s15, %s746_s0 }
   0x7   :  { %p503_p2 = pnand %p501_p1, %p498_p0 }
   0x9   :  { %506 = shalt.err (!%p503_p2)
}
   0xa   :  { %s507_s20 = scalar_lea.vmem %s17_s10, 128  ;;  %p512_p4 = scmp.lt.s32.totalorder %s17_s10, %s17_s10 }
   0xb   :  { %p508_p3 = scmp.ne.s32.totalorder %s17_s10, %s507_s20  ;;  %p513_p5 = scmp.lt.s32.totalorder %s507_s20, %s507_s20 }
   0xd   :  { %p514_p6 = por %p513_p5, %p512_p4 }
   0xf   :  { %p515_p7 = pnand %p514_p6, %p508_p3 }
  0x11   :  { %518 = shalt.err (!%p515_p7)
}
  0x12   :  { %19 = dma.hbm_to_vmem [thread:$0]  %s746_s0, 128, %s17_s10, [#allocation4]  }
  0x13   :  { %s519_s25 = scalar_lea.hbm %s747_s1, 512 }
  0x14   :  { %p520_p8 = scmp.ne.s32.totalorder %s747_s1, %s519_s25  ;;  %p523_p9 = scmp.lt.u32.totalorder %s519_s25, %s747_s1 }
  0x16   :  { %p525_p10 = pnand %p523_p9, %p520_p8 }
  0x18   :  { %528 = shalt.err (!%p525_p10)
}
  0x19   :  { %s529_s30 = scalar_lea.vmem %s621_s12, 512  ;;  %p534_p12 = scmp.lt.s32.totalorder %s621_s12, %s621_s12 }
  0x1a   :  { %p530_p11 = scmp.ne.s32.totalorder %s621_s12, %s529_s30  ;;  %p535_p13 = scmp.lt.s32.totalorder %s529_s30, %s529_s30 }
  0x1c   :  { %p536_p0 = por %p535_p13, %p534_p12 }
  0x1e   :  { %p537_p1 = pnand %p536_p0, %p530_p11 }
  0x20   :  { %540 = shalt.err (!%p537_p1)
}
  0x21   :  { %s571_s0 = smov 128   ;;  %s572_s3 = smov 8  }
  0x22   :  { %31 = dma.hbm_to_vmem [thread:$0]  %s747_s1, 512, %s621_s12, [#allocation7], %s571_s0, %s571_s0, %s572_s3  }
  0x23   :  { %563 = dma.done.wait [#allocation4], 128  }
  0x24   :  { %564 = vsyncadd [#allocation4], 4294967168 }
  0x25   :  { %565 = dma.done.wait [#allocation7], 512  }
  0x26   :  { %566 = vsyncadd [#allocation7], 4294966784  ;;  %v573_v0 = vmov 2   ;;  %v574_v1 = vmov 0   ;;  %v652_v2 = vld [vmem:[#allocation3] sm:$0xff]  ;;  %v575_v3 = vmov 3   ;;  %v55_v33 = vlaneseq }
  0x27   :  { %466 = vset.pattern.permute.xlu1 %v573_v0  ;;  %464 = vset.pattern.permute.xlu0 %v574_v1  ;;  %v576_v4 = vmov 1   ;;  %v577_v5 = vmov 4   ;;  %v578_v6 = vmov 5   ;;  %v579_v7 = vmov 6   ;;  %v46_v36 = vld [vmem:[#allocation6] sm:$0xff]  ;;  %s605_s1 = smov [#allocation8]  }
  0x28   :  { %73 = vperm.xlu1 %466, %v652_v2   ;;  %52 = vperm.xlu0 %464, %v652_v2   ;;  %v580_v8 = vmov 8   ;;  %v581_v9 = vmov 7   ;;  %v582_v10 = vmov 11   ;;  %v583_v11 = vmov 9   ;;  %s417_s6 = sshll.u32 %s605_s1, 4  ;;  %s418_s6 = int_to_ptr.vmem [resolvable:$true] %s417_s6 }
  0x29   :  { %v584_v12 = vmov 14   ;;  %v585_v13 = vmov 10   ;;  %v586_v14 = vmov 17   ;;  %v587_v15 = vmov 12   ;;  %s541_s7 = scalar_lea.vmem %s418_s6, 128  ;;  %p546_p3 = scmp.lt.s32.totalorder %s418_s6, %s418_s6 }
  0x2a   :  { %v588_v16 = vmov 20   ;;  %v589_v17 = vmov 13   ;;  %v590_v18 = vmov 23   ;;  %v591_v19 = vmov 15   ;;  %p542_p2 = scmp.ne.s32.totalorder %s418_s6, %s541_s7  ;;  %p547_p4 = scmp.lt.s32.totalorder %s541_s7, %s541_s7 }
  0x2b   :  { %v592_v20 = vmov 26   ;;  %v593_v21 = vmov 16   ;;  %v594_v22 = vmov 29   ;;  %v595_v23 = vmov 18  }
  0x2c   :  { %467 = vset.pattern.permute.xlu1 %v575_v3  ;;  %465 = vset.pattern.permute.xlu0 %v576_v4  ;;  %v596_v24 = vmov 31   ;;  %v597_v25 = vmov 19   ;;  %v598_v26 = vmov 21   ;;  %v599_v27 = vmov 22   ;;  %p548_p5 = por %p547_p4, %p546_p3 }
  0x2d   :  { %84 = vperm.xlu1 %467, %v652_v2   ;;  %62 = vperm.xlu0 %465, %v652_v2   ;;  %v600_v28 = vmov 24   ;;  %v601_v29 = vmov 25   ;;  %v602_v30 = vmov 27   ;;  %v603_v31 = vmov 28  }
  0x2e   :  { %v604_v32 = vmov 30   ;;  %v56_v34 = vshrl.u32 %v55_v33, 7  ;;  %p549_p6 = pnand %p548_p5, %p542_p2 }
  0x30   :  { %v686_v35 = vsub.s32 0, %v56_v34  ;;  %v688_v37 = vsub.s32 2, %v56_v34  ;;  %v691_v39 = vsub.s32 1, %v56_v34  ;;  %v693_v42 = vsub.s32 3, %v56_v34 }
  0x31   :  { %468 = vset.pattern.permute.xlu1 %v577_v5  ;;  %469 = vset.pattern.permute.xlu0 %v578_v6  ;;  %v697_v46 = vsub.s32 4, %v56_v34  ;;  %v699_v47 = vsub.s32 5, %v56_v34  ;;  %v704_v58 = vsub.s32 6, %v56_v34  ;;  %v707_v5 = vsub.s32 7, %v56_v34 }
  0x32   :  { %95 = vperm.xlu1 %468, %v652_v2   ;;  %106 = vperm.xlu0 %469, %v652_v2   ;;  %v58_v38 = vrot.slane %v46_v36, %v686_v35  ;;  %v79_v43 = vrot.slane %v46_v36, %v688_v37  ;;  %v68_v45 = vrot.slane %v46_v36, %v691_v39 }
  0x33   :  { %v90_v48 = vrot.slane %v46_v36, %v693_v42  ;;  %v101_v54 = vrot.slane %v46_v36, %v697_v46  ;;  %v112_v55 = vrot.slane %v46_v36, %v699_v47  ;;  %v123_v3 = vrot.slane %v46_v36, %v704_v58 }
  0x36   :  { %470 = vset.pattern.permute.xlu1 %v579_v7  ;;  %472 = vset.pattern.permute.xlu0 %v580_v8  ;;  %v47_v7 = vld [vmem:[#allocation6 + $0x8] sm:$0xff] }
  0x37   :  { %117 = vperm.xlu1 %470, %v652_v2   ;;  %139 = vperm.xlu0 %472, %v652_v2  }
  0x3b   :  { %471 = vset.pattern.permute.xlu1 %v581_v9  ;;  %475 = vset.pattern.permute.xlu0 %v582_v10 }
  0x3c   :  { %128 = vperm.xlu1 %471, %v652_v2   ;;  %172 = vperm.xlu0 %475, %v652_v2  }
  0x40   :  { %473 = vset.pattern.permute.xlu1 %v583_v11  ;;  %478 = vset.pattern.permute.xlu0 %v584_v12  ;;  %v134_v12 = vrot.slane %v46_v36, %v707_v5  ;;  %v189_v36 = vrot.slane %v47_v7, %v697_v46 }
  0x41   :  { %150 = vperm.xlu1 %473, %v652_v2   ;;  %205 = vperm.xlu0 %478, %v652_v2  }
  0x45   :  { %474 = vset.pattern.permute.xlu1 %v585_v13  ;;  %481 = vset.pattern.permute.xlu0 %v586_v14  ;;  %v145_v13 = vrot.slane %v47_v7, %v686_v35 }
  0x46   :  { %161 = vperm.xlu1 %474, %v652_v2   ;;  %238 = vperm.xlu0 %481, %v652_v2  }
  0x4a   :  { %476 = vset.pattern.permute.xlu1 %v587_v15  ;;  %484 = vset.pattern.permute.xlu0 %v588_v16 }
  0x4b   :  { %183 = vperm.xlu1 %476, %v652_v2   ;;  %271 = vperm.xlu0 %484, %v652_v2  }
  0x4f   :  { %477 = vset.pattern.permute.xlu1 %v589_v17  ;;  %487 = vset.pattern.permute.xlu0 %v590_v18 }
  0x50   :  { %194 = vperm.xlu1 %477, %v652_v2   ;;  %304 = vperm.xlu0 %487, %v652_v2  }
  0x54   :  { %479 = vset.pattern.permute.xlu1 %v591_v19  ;;  %490 = vset.pattern.permute.xlu0 %v592_v20  ;;  %v156_v20 = vrot.slane %v47_v7, %v691_v39 }
  0x55   :  { %216 = vperm.xlu1 %479, %v652_v2   ;;  %337 = vperm.xlu0 %490, %v652_v2  }
  0x59   :  { %480 = vset.pattern.permute.xlu1 %v593_v21  ;;  %493 = vset.pattern.permute.xlu0 %v594_v22 }
  0x5a   :  { %227 = vperm.xlu1 %480, %v652_v2   ;;  %370 = vperm.xlu0 %493, %v652_v2  }
  0x5e   :  { %482 = vset.pattern.permute.xlu1 %v595_v23  ;;  %496 = vset.pattern.permute.xlu0 %v596_v24 }
  0x5f   :  { %249 = vperm.xlu1 %482, %v652_v2  }
  0x63   :  { %483 = vset.pattern.permute.xlu1 %v597_v25 }
  0x64   :  { %260 = vperm.xlu1 %483, %v652_v2  }
  0x68   :  { %485 = vset.pattern.permute.xlu1 %v598_v26 }
  0x69   :  { %282 = vperm.xlu1 %485, %v652_v2  }
  0x6d   :  { %486 = vset.pattern.permute.xlu1 %v599_v27  ;;  %v167_v27 = vrot.slane %v47_v7, %v688_v37 }
  0x6e   :  { %293 = vperm.xlu1 %486, %v652_v2  }
  0x72   :  { %488 = vset.pattern.permute.xlu1 %v600_v28  ;;  %v178_v28 = vrot.slane %v47_v7, %v693_v42 }
  0x73   :  { %315 = vperm.xlu1 %488, %v652_v2  }
  0x77   :  { %489 = vset.pattern.permute.xlu1 %v601_v29 }
  0x78   :  { %326 = vperm.xlu1 %489, %v652_v2  }
  0x7c   :  { %491 = vset.pattern.permute.xlu1 %v602_v30 }
  0x7d   :  { %348 = vperm.xlu1 %491, %v652_v2  }
  0x81   :  { %492 = vset.pattern.permute.xlu1 %v603_v31 }
  0x82   :  { %359 = vperm.xlu1 %492, %v652_v2  }
  0x86   :  { %494 = vset.pattern.permute.xlu1 %v604_v32 }
  0x87   :  { %381 = vperm.xlu1 %494, %v652_v2  }
  0x8b   :  { %495 = vset.pattern.permute.xlu1 %v596_v24 }
  0x8c   :  { %392 = vperm.xlu1 %495, %v652_v2  }
  0xa7   :  { %v74_v40 = vpop.permute.xlu1 %73  ;;  %v53_v41 = vpop.permute.xlu0 %52 }
  0xa8   :  { %v59_v44 = vadd.f32 %v58_v38, %v53_v41  ;;  %v80_v51 = vadd.f32 %v79_v43, %v74_v40 }
  0xaa   :  { %v60_v52 = vand.u32 2147483647, %v59_v44  ;;  %v81_v59 = vand.u32 2147483647, %v80_v51 }
  0xac   :  { %v85_v49 = vpop.permute.xlu1 %84  ;;  %v63_v50 = vpop.permute.xlu0 %62 }
  0xad   :  { %v69_v53 = vadd.f32 %v68_v45, %v63_v50  ;;  %v91_v56 = vadd.f32 %v90_v48, %v85_v49  ;;  %v200_v48 = vrot.slane %v47_v7, %v699_v47  ;;  %v211_v49 = vrot.slane %v47_v7, %v704_v58 }
  0xaf   :  { %v70_v57 = vand.u32 2147483647, %v69_v53  ;;  %v92_v1 = vand.u32 2147483647, %v91_v56  ;;  %v222_v56 = vrot.slane %v47_v7, %v707_v5 }
  0xb1   :  { %v71_v60 = vadd.f32 %v70_v57, %v60_v52  ;;  %v96_v61 = vpop.permute.xlu1 %95  ;;  %v107_v62 = vpop.permute.xlu0 %106 }
  0xb2   :  { %v102_v63 = vadd.f32 %v101_v54, %v96_v61  ;;  %v113_v0 = vadd.f32 %v112_v55, %v107_v62 }
  0xb3   :  { %v82_v2 = vadd.f32 %v81_v59, %v71_v60  ;;  %v48_v60 = vld [vmem:[#allocation6 + $0x10] sm:$0xff] }
  0xb4   :  { %v103_v4 = vand.u32 2147483647, %v102_v63  ;;  %v114_v8 = vand.u32 2147483647, %v113_v0 }
  0xb5   :  { %v93_v6 = vadd.f32 %v92_v1, %v82_v2  ;;  %v233_v1 = vrot.slane %v48_v60, %v686_v35  ;;  %v244_v2 = vrot.slane %v48_v60, %v691_v39 }
  0xb6   :  { %v118_v9 = vpop.permute.xlu1 %117  ;;  %v140_v14 = vpop.permute.xlu0 %139 }
  0xb7   :  { %v104_v10 = vadd.f32 %v103_v4, %v93_v6  ;;  %v124_v11 = vadd.f32 %v123_v3, %v118_v9  ;;  %v146_v19 = vadd.f32 %v145_v13, %v140_v14 }
  0xb9   :  { %v115_v15 = vadd.f32 %v114_v8, %v104_v10  ;;  %v125_v16 = vand.u32 2147483647, %v124_v11  ;;  %v147_v24 = vand.u32 2147483647, %v146_v19  ;;  %v255_v11 = vrot.slane %v48_v60, %v688_v37 }
  0xbb   :  { %v129_v17 = vpop.permute.xlu1 %128  ;;  %v126_v21 = vadd.f32 %v125_v16, %v115_v15  ;;  %v173_v29 = vpop.permute.xlu0 %172 }
  0xbc   :  { %v135_v18 = vadd.f32 %v134_v12, %v129_v17  ;;  %v179_v34 = vadd.f32 %v178_v28, %v173_v29  ;;  %v266_v17 = vrot.slane %v48_v60, %v693_v42 }
  0xbe   :  { %v136_v22 = vand.u32 2147483647, %v135_v18  ;;  %v180_v43 = vand.u32 2147483647, %v179_v34  ;;  %v277_v18 = vrot.slane %v48_v60, %v697_v46 }
  0xc0   :  { %v137_v23 = vadd.f32 %v136_v22, %v126_v21  ;;  %v151_v25 = vpop.permute.xlu1 %150  ;;  %v206_v50 = vpop.permute.xlu0 %205 }
  0xc1   :  { %v157_v26 = vadd.f32 %v156_v20, %v151_v25  ;;  %v212_v55 = vadd.f32 %v211_v49, %v206_v50  ;;  %v288_v25 = vrot.slane %v48_v60, %v699_v47 }
  0xc2   :  { %v148_v30 = vadd.f32 %v147_v24, %v137_v23 }
  0xc3   :  { %v158_v31 = vand.u32 2147483647, %v157_v26  ;;  %v213_v62 = vand.u32 2147483647, %v212_v55 }
  0xc5   :  { %v162_v32 = vpop.permute.xlu1 %161  ;;  %v159_v38 = vadd.f32 %v158_v31, %v148_v30  ;;  %v239_v3 = vpop.permute.xlu0 %238 }
  0xc6   :  { %v168_v33 = vadd.f32 %v167_v27, %v162_v32  ;;  %v245_v10 = vadd.f32 %v244_v2, %v239_v3  ;;  %v299_v32 = vrot.slane %v48_v60, %v704_v58 }
  0xc8   :  { %v169_v40 = vand.u32 2147483647, %v168_v33  ;;  %v246_v14 = vand.u32 2147483647, %v245_v10  ;;  %v310_v33 = vrot.slane %v48_v60, %v707_v5 }
  0xca   :  { %v170_v41 = vadd.f32 %v169_v40, %v159_v38  ;;  %v184_v44 = vpop.permute.xlu1 %183  ;;  %v272_v19 = vpop.permute.xlu0 %271  ;;  %v49_v40 = vld [vmem:[#allocation6 + $0x18] sm:$0xff] }
  0xcb   :  { %v190_v45 = vadd.f32 %v189_v36, %v184_v44  ;;  %v278_v24 = vadd.f32 %v277_v18, %v272_v19  ;;  %v343_v55 = vrot.slane %v49_v40, %v688_v37  ;;  %v398_v18 = vrot.slane %v49_v40, %v707_v5 }
  0xcc   :  { %v181_v51 = vadd.f32 %v180_v43, %v170_v41 }
  0xcd   :  { %v191_v52 = vand.u32 2147483647, %v190_v45  ;;  %v279_v29 = vand.u32 2147483647, %v278_v24  ;;  %v321_v45 = vrot.slane %v49_v40, %v686_v35 }
  0xcf   :  { %v195_v53 = vpop.permute.xlu1 %194  ;;  %v192_v57 = vadd.f32 %v191_v52, %v181_v51  ;;  %v305_v34 = vpop.permute.xlu0 %304 }
  0xd0   :  { %v201_v54 = vadd.f32 %v200_v48, %v195_v53  ;;  %v311_v44 = vadd.f32 %v310_v33, %v305_v34 }
  0xd2   :  { %v202_v59 = vand.u32 2147483647, %v201_v54  ;;  %v312_v51 = vand.u32 2147483647, %v311_v44  ;;  %v332_v54 = vrot.slane %v49_v40, %v691_v39  ;;  %v376_v39 = vrot.slane %v49_v40, %v699_v47 }
  0xd4   :  { %v203_v61 = vadd.f32 %v202_v59, %v192_v57  ;;  %v217_v63 = vpop.permute.xlu1 %216 }
  0xd5   :  { %v223_v0 = vadd.f32 %v222_v56, %v217_v63  ;;  %v338_v56 = vpop.permute.xlu0 %337  ;;  %v354_v63 = vrot.slane %v49_v40, %v693_v42 }
  0xd6   :  { %v214_v4 = vadd.f32 %v213_v62, %v203_v61  ;;  %v344_v62 = vadd.f32 %v343_v55, %v338_v56 }
  0xd7   :  { %v224_v6 = vand.u32 2147483647, %v223_v0 }
  0xd8   :  { %v345_v2 = vand.u32 2147483647, %v344_v62 }
  0xd9   :  { %v228_v8 = vpop.permute.xlu1 %227  ;;  %v225_v7 = vadd.f32 %v224_v6, %v214_v4  ;;  %v365_v6 = vrot.slane %v49_v40, %v697_v46 }
  0xda   :  { %v234_v9 = vadd.f32 %v233_v1, %v228_v8  ;;  %v371_v8 = vpop.permute.xlu0 %370 }
  0xdc   :  { %v235_v12 = vand.u32 2147483647, %v234_v9 }
  0xde   :  { %v236_v13 = vadd.f32 %v235_v12, %v225_v7  ;;  %v250_v15 = vpop.permute.xlu1 %249  ;;  %v377_v7 = vadd.f32 %v376_v39, %v371_v8  ;;  %v387_v12 = vrot.slane %v49_v40, %v704_v58 }
  0xdf   :  { %v256_v16 = vadd.f32 %v255_v11, %v250_v15 }
  0xe0   :  { %v247_v20 = vadd.f32 %v246_v14, %v236_v13  ;;  %v378_v15 = vand.u32 2147483647, %v377_v7 }
  0xe1   :  { %v257_v21 = vand.u32 2147483647, %v256_v16 }
  0xe3   :  { %v261_v22 = vpop.permute.xlu1 %260  ;;  %v258_v26 = vadd.f32 %v257_v21, %v247_v20 }
  0xe4   :  { %v267_v23 = vadd.f32 %v266_v17, %v261_v22 }
  0xe6   :  { %v268_v27 = vand.u32 2147483647, %v267_v23 }
  0xe8   :  { %v269_v28 = vadd.f32 %v268_v27, %v258_v26  ;;  %v283_v30 = vpop.permute.xlu1 %282 }
  0xe9   :  { %v289_v31 = vadd.f32 %v288_v25, %v283_v30 }
  0xea   :  { %v280_v36 = vadd.f32 %v279_v29, %v269_v28 }
  0xeb   :  { %v290_v38 = vand.u32 2147483647, %v289_v31 }
  0xed   :  { %v294_v41 = vpop.permute.xlu1 %293  ;;  %v291_v48 = vadd.f32 %v290_v38, %v280_v36 }
  0xee   :  { %v300_v43 = vadd.f32 %v299_v32, %v294_v41 }
  0xf0   :  { %v301_v49 = vand.u32 2147483647, %v300_v43 }
  0xf2   :  { %v302_v50 = vadd.f32 %v301_v49, %v291_v48  ;;  %v316_v52 = vpop.permute.xlu1 %315 }
  0xf3   :  { %v322_v53 = vadd.f32 %v321_v45, %v316_v52 }
  0xf4   :  { %v313_v57 = vadd.f32 %v312_v51, %v302_v50 }
  0xf5   :  { %v323_v59 = vand.u32 2147483647, %v322_v53 }
  0xf7   :  { %v327_v60 = vpop.permute.xlu1 %326  ;;  %v324_v0 = vadd.f32 %v323_v59, %v313_v57 }
  0xf8   :  { %v333_v61 = vadd.f32 %v332_v54, %v327_v60 }
  0xfa   :  { %v334_v35 = vand.u32 2147483647, %v333_v61 }
  0xfc   :  { %v335_v1 = vadd.f32 %v334_v35, %v324_v0  ;;  %v349_v3 = vpop.permute.xlu1 %348 }
  0xfd   :  { %v355_v4 = vadd.f32 %v354_v63, %v349_v3 }
  0xfe   :  { %v346_v37 = vadd.f32 %v345_v2, %v335_v1 }
  0xff   :  { %v356_v9 = vand.u32 2147483647, %v355_v4 }
 0x101   :  { %v360_v10 = vpop.permute.xlu1 %359  ;;  %v357_v13 = vadd.f32 %v356_v9, %v346_v37 }
 0x102   :  { %v366_v11 = vadd.f32 %v365_v6, %v360_v10 }
 0x104   :  { %v367_v42 = vand.u32 2147483647, %v366_v11 }
 0x106   :  { %v368_v14 = vadd.f32 %v367_v42, %v357_v13  ;;  %v382_v16 = vpop.permute.xlu1 %381 }
 0x107   :  { %v388_v17 = vadd.f32 %v387_v12, %v382_v16 }
 0x108   :  { %v379_v19 = vadd.f32 %v378_v15, %v368_v14 }
 0x109   :  { %v389_v46 = vand.u32 2147483647, %v388_v17 }
 0x10b   :  { %v393_v20 = vpop.permute.xlu1 %392  ;;  %v390_v21 = vadd.f32 %v389_v46, %v379_v19 }
 0x10c   :  { %v399_v47 = vadd.f32 %v398_v18, %v393_v20 }
 0x10e   :  { %v400_v22 = vand.u32 2147483647, %v399_v47 }
 0x110   :  { %v401_v23 = vadd.f32 %v400_v22, %v390_v21 }
 0x112   :  { %v409_v24 = vsub.f32 0.0, %v401_v23 }
 0x114   :  { %410 = vst [vmem:[#allocation8] sm:$0xff] %v409_v24 }
 0x115   :  { %552 = shalt.err (!%p549_p6)
}
 0x116   :  { %s553_s10 = scalar_lea.hbm %s748_s2, 128 }
 0x117   :  { %p554_p7 = scmp.ne.s32.totalorder %s748_s2, %s553_s10  ;;  %p557_p8 = scmp.lt.u32.totalorder %s553_s10, %s748_s2 }
 0x119   :  { %p559_p9 = pnand %p557_p8, %p554_p7 }
 0x11b   :  { %562 = shalt.err (!%p559_p9)
}
 0x11c   :  { %420 = dma.vmem_to_hbm [thread:$0]  %s418_s6, 128, %s748_s2, [#allocation5]  }
 0x11d   :  { %567 = dma.done.wait [#allocation5], 128  }
 0x11e   :  { %568 = vsyncadd [#allocation5], 4294967168 }
 0x11f   :  { %424 = vsyncpa [#allocation4], 1 }
 0x120   :  { %425 = vsyncpa [#allocation7], 1 }
 0x121   :  { %426 = vsyncpa [#allocation5], 1 }

</bundles_post_ra>
